<compile_context>
chip_gen: v7x
topology: tpu7x:2x2x1
jax: 0.10.0
libtpu: 0.0.40
codegen_flags: <defaults>
</compile_context>

<pallas_src>
import jax
import jax.numpy as jnp
from jax.experimental import pallas as pl
from jax.experimental.pallas import tpu as pltpu


# ---------------------------------------------------------------------------
# Kernels
# ---------------------------------------------------------------------------

def linear_kernel(x_ref, w_ref, lb_ref, o_ref):
    """H[:, j-tile] = W @ X[:, j-tile] + lb   (channel-major, nodes on lanes)."""
    h = jnp.dot(w_ref[...], x_ref[...], preferred_element_type=jnp.float32)
    h = h + lb_ref[...]                                   # (C_out, 1) lane-broadcast
    o_ref[...] = h.astype(o_ref.dtype)


def make_prop_kernel(mask_on_agg: bool, add_bias: bool, apply_relu: bool):
    """One A-propagation, tiled over (j = output node tile, k = contraction tile).

        agg   = H @ A^T                       (k-accumulated in f32 scratch)
        out_j = agg*M + skip*(1-M)            if mask_on_agg   (first propagate)
              = agg*(1-M) + skip*M [+ b]      otherwise        (mask_reverse propagate)
        [+ ReLU]   fused into the last-k epilogue.
    """
    def kernel(hk_ref, at_ref, skip_ref, m_ref, b_ref, o_ref, acc_ref):
        k = pl.program_id(1)

        @pl.when(k == 0)
        def _init():
            acc_ref[...] = jnp.zeros_like(acc_ref)

        acc_ref[...] += jnp.dot(hk_ref[...], at_ref[...],
                                preferred_element_type=jnp.float32)

        @pl.when(k == pl.num_programs(1) - 1)
        def _epilogue():
            m = m_ref[...]                                # (1, tn)   f32
            agg = acc_ref[...]                            # (C, tn)   f32
            skip = skip_ref[...].astype(jnp.float32)      # (C, tn)
            if mask_on_agg:
                out = agg * m + skip * (1.0 - m)
            else:
                out = agg * (1.0 - m) + skip * m
            if add_bias:
                out = out + b_ref[...]                    # (C, 1) lane-broadcast
            if apply_relu:
                out = jnp.maximum(out, 0.0)
            o_ref[...] = out.astype(o_ref.dtype)

    return kernel


# ---------------------------------------------------------------------------
# pallas_call wrappers
# ---------------------------------------------------------------------------

def _linear(X, W, lb, *, tn, out_dtype):
    C_in, Np = X.shape
    C_out = W.shape[0]
    return pl.pallas_call(
        linear_kernel,
        out_shape=jax.ShapeDtypeStruct((C_out, Np), out_dtype),
        grid_spec=pltpu.PrefetchScalarGridSpec(
            num_scalar_prefetch=0,
            grid=(Np // tn,),
            in_specs=[
                pl.BlockSpec((C_in, tn), lambda j: (0, j)),    # X node tile (bf16)
                pl.BlockSpec((C_out, C_in), lambda j: (0, 0)), # W (resident, bf16)
                pl.BlockSpec((C_out, 1), lambda j: (0, 0)),    # lb (resident, f32)
            ],
            out_specs=pl.BlockSpec((C_out, tn), lambda j: (0, j)),
        ),
        compiler_params=pltpu.CompilerParams(dimension_semantics=("parallel",)),
    )(X, W, lb)


def _propagate(Hmat, At_bf16, Skip, M_row, bias, *, mask_on_agg, add_bias,
               apply_relu, tn, tk, out_dtype):
    C, Np = Hmat.shape
    kernel = make_prop_kernel(mask_on_agg, add_bias, apply_relu)
    return pl.pallas_call(
        kernel,
        out_shape=jax.ShapeDtypeStruct((C, Np), out_dtype),
        grid_spec=pltpu.PrefetchScalarGridSpec(
            num_scalar_prefetch=0,
            grid=(Np // tn, Np // tk),
            in_specs=[
                pl.BlockSpec((C, tk), lambda j, k: (0, k)),    # matmul input (bf16)
                pl.BlockSpec((tk, tn), lambda j, k: (k, j)),   # A^T panel (bf16)
                pl.BlockSpec((C, tn), lambda j, k: (0, j)),    # skip term (bf16)
                pl.BlockSpec((1, tn), lambda j, k: (0, j)),    # node mask row (f32)
                pl.BlockSpec((C, 1), lambda j, k: (0, 0)),     # bias (resident, f32)
            ],
            out_specs=pl.BlockSpec((C, tn), lambda j, k: (0, j)),
            scratch_shapes=[pltpu.VMEM((C, tn), jnp.float32)],
        ),
        compiler_params=pltpu.CompilerParams(
            dimension_semantics=("parallel", "arbitrary")),
    )(Hmat, At_bf16, Skip, M_row, bias)


# ---------------------------------------------------------------------------
# Glue + forward pass
# ---------------------------------------------------------------------------

def _round_up(x, m):
    return (x + m - 1) // m * m


def _pad2d(x, shape):
    return jnp.pad(x, [(0, s - d) for d, s in zip(x.shape, shape)])


def _pick_tiles(N):
    if N >= 512:
        Np = _round_up(N, 512)
        return Np, 512, 512
    Np = _round_up(N, 128)
    return Np, Np, Np


def build_norm_adjacency_T(edge_index, num_nodes):
    """A^T[src, dst] = deg^{-1/2}[src] * deg^{-1/2}[dst] with self-loops, so that
    propagate(h) == H @ A^T for channel-major features H of shape (C, N)."""
    row, col = edge_index[0], edge_index[1]       # row = source (x_j), col = target
    self_idx = jnp.arange(num_nodes, dtype=row.dtype)
    row = jnp.concatenate([row, self_idx])
    col = jnp.concatenate([col, self_idx])
    deg = jnp.zeros((num_nodes,), jnp.float32).at[col].add(1.0)
    deg_inv_sqrt = jnp.where(deg > 0, deg ** -0.5, 0.0)
    norm = deg_inv_sqrt[row] * deg_inv_sqrt[col]
    return jnp.zeros((num_nodes, num_nodes), jnp.float32).at[row, col].add(norm)


@jax.jit
def fpgcn_forward(x, edge_index, M_bool, params):
    """FPGCN forward: conv1 (FPLayer, mask_reverse=True) -> ReLU -> conv2."""
    N, C_in = x.shape
    hidden = params["W1"].shape[0]
    Np, tn, tk = _pick_tiles(N)
    Cin_p = _round_up(C_in, 8)
    Ch = _round_up(hidden, 8)

    # Plain-JAX glue: normalized (transposed) adjacency, channel-major features.
    At = build_norm_adjacency_T(edge_index, N)
    At = _pad2d(At, (Np, Np)).astype(jnp.bfloat16)        # A is read 4x: bf16 halves HBM traffic
    X = _pad2d(x.T, (Cin_p, Np)).astype(jnp.bfloat16)     # (C_in, Np), nodes on the lane axis
    M_row = _pad2d(M_bool.astype(jnp.float32)[None, :], (1, Np))

    W1 = _pad2d(params["W1"], (Ch, Cin_p)).astype(jnp.bfloat16)
    lb1 = _pad2d(params["lb1"], (Ch, 1))
    b1 = _pad2d(params["b1"], (Ch, 1))
    W2 = _pad2d(params["W2"], (Ch, Ch)).astype(jnp.bfloat16)
    lb2 = _pad2d(params["lb2"], (Ch, 1))
    b2 = _pad2d(params["b2"], (Ch, 1))

    def fp_layer(Xc, W, lb, b, *, apply_relu, out_dtype):
        H = _linear(Xc, W, lb, tn=tn, out_dtype=jnp.bfloat16)
        Out1 = _propagate(H, At, H, M_row, b, mask_on_agg=True, add_bias=False,
                          apply_relu=False, tn=tn, tk=tk, out_dtype=jnp.bfloat16)
        return _propagate(Out1, At, H, M_row, b, mask_on_agg=False, add_bias=True,
                          apply_relu=apply_relu, tn=tn, tk=tk, out_dtype=out_dtype)

    h1 = fp_layer(X, W1, lb1, b1, apply_relu=True, out_dtype=jnp.bfloat16)
    h2 = fp_layer(h1, W2, lb2, b2, apply_relu=False, out_dtype=jnp.float32)
    return h2[:hidden, :N].T                              # back to node-major (N, hidden)


# ---------------------------------------------------------------------------
# Pure-JAX reference (same bf16 quantization points as the kernel pipeline)
# ---------------------------------------------------------------------------

def fpgcn_reference(x, edge_index, M_bool, params):
    N = x.shape[0]
    f32, bf16 = jnp.float32, jnp.bfloat16
    A_bf = build_norm_adjacency_T(edge_index, N).T.astype(bf16)   # A[dst, src]
    Mf = M_bool.astype(f32)[:, None]
    invM = 1.0 - Mf

    def layer(inp_bf, W, lb, b, *, relu):
        h = jnp.dot(inp_bf, W.astype(bf16).T, preferred_element_type=f32) + lb.T
        h_bf = h.astype(bf16)
        h32 = h_bf.astype(f32)
        out1 = jnp.dot(A_bf, h_bf, preferred_element_type=f32) * Mf + h32 * invM
        out = (jnp.dot(A_bf, out1.astype(bf16), preferred_element_type=f32) * invM
               + h32 * Mf + b.T)
        if relu:
            out = jnp.maximum(out, 0.0)
        return out

    o1 = layer(x.astype(bf16), params["W1"], params["lb1"], params["b1"], relu=True)
    o2 = layer(o1.astype(bf16), params["W2"], params["lb2"], params["b2"], relu=False)
    return o2


if __name__ == "__main__":
    N = 16             # number of graph nodes
    in_channels = 4
    hidden_channels = 32

    key = jax.random.PRNGKey(0)
    kx, kw1, klb1, kw2, klb2, km = jax.random.split(key, 6)

    x = jax.random.normal(kx, (N, in_channels), jnp.float32)

    # Deterministic ring graph with edges in both directions.
    src = jnp.arange(N, dtype=jnp.int32)
    dst = (src + 1) % N
    edge_index = jnp.stack([jnp.concatenate([src, dst]),
                            jnp.concatenate([dst, src])], axis=0)   # (2, E)

    # Per-node boolean observation mask M.
    M_bool = jax.random.bernoulli(km, 0.5, (N,))

    # Parameters (torch Linear weight layout (out, in); FPLayer.bias zero-init).
    params = {
        "W1":  jax.random.normal(kw1, (hidden_channels, in_channels), jnp.float32) * 0.1,
        "lb1": jax.random.normal(klb1, (hidden_channels, 1), jnp.float32) * 0.1,
        "b1":  jnp.zeros((hidden_channels, 1), jnp.float32),
        "W2":  jax.random.normal(kw2, (hidden_channels, hidden_channels), jnp.float32) * 0.1,
        "lb2": jax.random.normal(klb2, (hidden_channels, 1), jnp.float32) * 0.1,
        "b2":  jnp.zeros((hidden_channels, 1), jnp.float32),
    }

    out = jax.block_until_ready(fpgcn_forward(x, edge_index, M_bool, params))
    ref = jax.block_until_ready(fpgcn_reference(x, edge_index, M_bool, params))

    assert out.shape == (N, hidden_channels), out.shape
    max_diff = float(jnp.max(jnp.abs(out - ref)))
    assert jnp.allclose(out, ref, atol=1e-2, rtol=1e-2), f"max abs diff = {max_diff}"

    print("KERNEL_OK")
</pallas_src>

<mosaic_0001>
module attributes {stable_mosaic.version = 11 : i64} {
  func.func private @main(%arg0: i32) attributes {dimension_semantics = [#tpu.dimension_semantics<core_parallel>], iteration_bounds = array<i64: 2>, tpu.core_type = #tpu.core_type<sc_scalar_subcore>, window_params = []} {
    return
  }
}

module attributes {stable_mosaic.version = 11 : i64} {
  func.func private @main(%arg0: i32) attributes {dimension_semantics = [#tpu.dimension_semantics<core_parallel>], iteration_bounds = array<i64: 2>, tpu.core_type = #tpu.core_type<sc_scalar_subcore>, window_params = []} {
    return
  }
}

module attributes {stable_mosaic.version = 11 : i64} {
  func.func @linear_kernel(%arg0: i32, %arg1: memref<8x128xbf16, #tpu.memory_space<vmem>>, %arg2: memref<32x8xbf16, #tpu.memory_space<vmem>>, %arg3: memref<32x1xf32, #tpu.memory_space<vmem>>, %arg4: memref<32x128xbf16, #tpu.memory_space<vmem>>) attributes {dimension_semantics = [#tpu.dimension_semantics<parallel>], iteration_bounds = array<i64: 1>, scalar_prefetch = 0 : i64, scratch_operands = 0 : i64, tpu.core_type = #tpu.core_type<tc>, window_params = [{transform_indices = @transform_0, window_bounds = array<i64: 8, 128>}, {pipeline_mode = #tpu.pipeline_mode<synchronous>, transform_indices = @transform_1, window_bounds = array<i64: 32, 8>}, {pipeline_mode = #tpu.pipeline_mode<synchronous>, transform_indices = @transform_2, window_bounds = array<i64: 32, 1>}, {transform_indices = @transform_3, window_bounds = array<i64: 32, 128>}]} {
    %c0 = arith.constant 0 : index
    %c0_0 = arith.constant 0 : index
    %0 = vector.load %arg2[%c0, %c0_0] : memref<32x8xbf16, #tpu.memory_space<vmem>>, vector<32x8xbf16>
    %c0_1 = arith.constant 0 : index
    %c0_2 = arith.constant 0 : index
    %1 = vector.load %arg1[%c0_1, %c0_2] : memref<8x128xbf16, #tpu.memory_space<vmem>>, vector<8x128xbf16>
    %cst = arith.constant dense<0.000000e+00> : vector<32x128xf32>
    %2 = tpu.matmul %0, %1, %cst {dimension_numbers = #tpu.dot_dimension_numbers<[1], [0], [0], [1], [0, 0, 1, 1], [], []>} : vector<32x8xbf16>, vector<8x128xbf16>, vector<32x128xf32> -> vector<32x128xf32>
    %c0_3 = arith.constant 0 : index
    %c0_4 = arith.constant 0 : index
    %3 = vector.load %arg3[%c0_3, %c0_4] : memref<32x1xf32, #tpu.memory_space<vmem>>, vector<32x1xf32>
    %4 = vector.broadcast %3 : vector<32x1xf32> to vector<32x128xf32>
    %5 = arith.addf %2, %4 : vector<32x128xf32>
    %6 = arith.truncf %5 : vector<32x128xf32> to vector<32x128xbf16>
    %c0_5 = arith.constant 0 : index
    %c0_6 = arith.constant 0 : index
    %7 = vector.load %arg4[%c0_5, %c0_6] : memref<32x128xbf16, #tpu.memory_space<vmem>>, vector<32x128xbf16>
    tpu.vector_store %arg4[%c0_5, %c0_6], %6 {strides = array<i32>} : memref<32x128xbf16, #tpu.memory_space<vmem>>, vector<32x128xbf16>,
    return
  }
  func.func @transform_0(%arg0: i32) -> (i32, i32) {
    %c0_i32 = arith.constant 0 : i32
    %c0_i32_0 = arith.constant 0 : i32
    return %c0_i32, %arg0 : i32, i32
  }
  func.func @transform_1(%arg0: i32) -> (i32, i32) {
    %c0_i32 = arith.constant 0 : i32
    %c0_i32_0 = arith.constant 0 : i32
    %c0_i32_1 = arith.constant 0 : i32
    return %c0_i32, %c0_i32_0 : i32, i32
  }
  func.func @transform_2(%arg0: i32) -> (i32, i32) {
    %c0_i32 = arith.constant 0 : i32
    %c0_i32_0 = arith.constant 0 : i32
    %c0_i32_1 = arith.constant 0 : i32
    return %c0_i32, %c0_i32_0 : i32, i32
  }
  func.func @transform_3(%arg0: i32) -> (i32, i32) {
    %c0_i32 = arith.constant 0 : i32
    %c0_i32_0 = arith.constant 0 : i32
    return %c0_i32, %arg0 : i32, i32
  }
}

module attributes {stable_mosaic.version = 11 : i64} {
  func.func @kernel(%arg0: i32, %arg1: i32, %arg2: memref<32x128xbf16, #tpu.memory_space<vmem>>, %arg3: memref<128x128xbf16, #tpu.memory_space<vmem>>, %arg4: memref<32x128xbf16, #tpu.memory_space<vmem>>, %arg5: memref<1x128xf32, #tpu.memory_space<vmem>>, %arg6: memref<32x1xf32, #tpu.memory_space<vmem>>, %arg7: memref<32x128xbf16, #tpu.memory_space<vmem>>, %arg8: memref<32x128xf32, #tpu.memory_space<vmem>>) attributes {dimension_semantics = [#tpu.dimension_semantics<parallel>, #tpu.dimension_semantics<arbitrary>], iteration_bounds = array<i64: 1, 1>, scalar_prefetch = 0 : i64, scratch_operands = 1 : i64, tpu.core_type = #tpu.core_type<tc>, window_params = [{transform_indices = @transform_0, window_bounds = array<i64: 32, 128>}, {transform_indices = @transform_1, window_bounds = array<i64: 128, 128>}, {transform_indices = @transform_2, window_bounds = array<i64: 32, 128>}, {transform_indices = @transform_3, window_bounds = array<i64: 1, 128>}, {pipeline_mode = #tpu.pipeline_mode<synchronous>, transform_indices = @transform_4, window_bounds = array<i64: 32, 1>}, {transform_indices = @transform_5, window_bounds = array<i64: 32, 128>}]} {
    %c0_i32 = arith.constant 0 : i32
    %0 = arith.cmpi eq, %arg1, %c0_i32 : i32
    %1 = arith.extui %0 : i1 to i32
    %c0_i32_0 = arith.constant 0 : i32
    %2 = arith.cmpi ne, %1, %c0_i32_0 : i32
    scf.if %2 {
      %cst_10 = arith.constant 0.000000e+00 : f32
      %12 = vector.broadcast %cst_10 : f32 to vector<32x128xf32>
      %c0_11 = arith.constant 0 : index
      %c0_12 = arith.constant 0 : index
      %13 = vector.load %arg8[%c0_11, %c0_12] : memref<32x128xf32, #tpu.memory_space<vmem>>, vector<32x128xf32>
      tpu.vector_store %arg8[%c0_11, %c0_12], %12 {strides = array<i32>} : memref<32x128xf32, #tpu.memory_space<vmem>>, vector<32x128xf32>,
    } else {
    }
    %c0 = arith.constant 0 : index
    %c0_1 = arith.constant 0 : index
    %3 = vector.load %arg8[%c0, %c0_1] : memref<32x128xf32, #tpu.memory_space<vmem>>, vector<32x128xf32>
    %c0_2 = arith.constant 0 : index
    %c0_3 = arith.constant 0 : index
    %4 = vector.load %arg2[%c0_2, %c0_3] : memref<32x128xbf16, #tpu.memory_space<vmem>>, vector<32x128xbf16>
    %c0_4 = arith.constant 0 : index
    %c0_5 = arith.constant 0 : index
    %5 = vector.load %arg3[%c0_4, %c0_5] : memref<128x128xbf16, #tpu.memory_space<vmem>>, vector<128x128xbf16>
    %cst = arith.constant dense<0.000000e+00> : vector<32x128xf32>
    %6 = tpu.matmul %4, %5, %cst {dimension_numbers = #tpu.dot_dimension_numbers<[1], [0], [0], [1], [0, 0, 1, 1], [], []>} : vector<32x128xbf16>, vector<128x128xbf16>, vector<32x128xf32> -> vector<32x128xf32>
    %7 = arith.addf %3, %6 : vector<32x128xf32>
    %c0_6 = arith.constant 0 : index
    %c0_7 = arith.constant 0 : index
    %8 = vector.load %arg8[%c0_6, %c0_7] : memref<32x128xf32, #tpu.memory_space<vmem>>, vector<32x128xf32>
    tpu.vector_store %arg8[%c0_6, %c0_7], %7 {strides = array<i32>} : memref<32x128xf32, #tpu.memory_space<vmem>>, vector<32x128xf32>,
    %c0_i32_8 = arith.constant 0 : i32
    %9 = arith.cmpi eq, %arg1, %c0_i32_8 : i32
    %10 = arith.extui %9 : i1 to i32
    %c0_i32_9 = arith.constant 0 : i32
    %11 = arith.cmpi ne, %10, %c0_i32_9 : i32
    scf.if %11 {
      %c0_10 = arith.constant 0 : index
      %c0_11 = arith.constant 0 : index
      %12 = vector.load %arg5[%c0_10, %c0_11] : memref<1x128xf32, #tpu.memory_space<vmem>>, vector<1x128xf32>
      %c0_12 = arith.constant 0 : index
      %c0_13 = arith.constant 0 : index
      %13 = vector.load %arg8[%c0_12, %c0_13] : memref<32x128xf32, #tpu.memory_space<vmem>>, vector<32x128xf32>
      %c0_14 = arith.constant 0 : index
      %c0_15 = arith.constant 0 : index
      %14 = vector.load %arg4[%c0_14, %c0_15] : memref<32x128xbf16, #tpu.memory_space<vmem>>, vector<32x128xbf16>
      %15 = arith.extf %14 : vector<32x128xbf16> to vector<32x128xf32>
      %16 = vector.broadcast %12 : vector<1x128xf32> to vector<32x128xf32>
      %17 = arith.mulf %13, %16 : vector<32x128xf32>
      %cst_16 = arith.constant 1.000000e+00 : f32
      %18 = vector.broadcast %cst_16 : f32 to vector<1x128xf32>
      %19 = arith.subf %18, %12 : vector<1x128xf32>
      %20 = vector.broadcast %19 : vector<1x128xf32> to vector<32x128xf32>
      %21 = arith.mulf %15, %20 : vector<32x128xf32>
      %22 = arith.addf %17, %21 : vector<32x128xf32>
      %23 = arith.truncf %22 : vector<32x128xf32> to vector<32x128xbf16>
      %c0_17 = arith.constant 0 : index
      %c0_18 = arith.constant 0 : index
      %24 = vector.load %arg7[%c0_17, %c0_18] : memref<32x128xbf16, #tpu.memory_space<vmem>>, vector<32x128xbf16>
      tpu.vector_store %arg7[%c0_17, %c0_18], %23 {strides = array<i32>} : memref<32x128xbf16, #tpu.memory_space<vmem>>, vector<32x128xbf16>,
    } else {
    }
    return
  }
  func.func @transform_0(%arg0: i32, %arg1: i32) -> (i32, i32) {
    %c0_i32 = arith.constant 0 : i32
    %c0_i32_0 = arith.constant 0 : i32
    return %c0_i32, %arg1 : i32, i32
  }
  func.func @transform_1(%arg0: i32, %arg1: i32) -> (i32, i32) {
    %c0_i32 = arith.constant 0 : i32
    return %arg1, %arg0 : i32, i32
  }
  func.func @transform_2(%arg0: i32, %arg1: i32) -> (i32, i32) {
    %c0_i32 = arith.constant 0 : i32
    %c0_i32_0 = arith.constant 0 : i32
    return %c0_i32, %arg0 : i32, i32
  }
  func.func @transform_3(%arg0: i32, %arg1: i32) -> (i32, i32) {
    %c0_i32 = arith.constant 0 : i32
    %c0_i32_0 = arith.constant 0 : i32
    return %c0_i32, %arg0 : i32, i32
  }
  func.func @transform_4(%arg0: i32, %arg1: i32) -> (i32, i32) {
    %c0_i32 = arith.constant 0 : i32
    %c0_i32_0 = arith.constant 0 : i32
    %c0_i32_1 = arith.constant 0 : i32
    return %c0_i32, %c0_i32_0 : i32, i32
  }
  func.func @transform_5(%arg0: i32, %arg1: i32) -> (i32, i32) {
    %c0_i32 = arith.constant 0 : i32
    %c0_i32_0 = arith.constant 0 : i32
    return %c0_i32, %arg0 : i32, i32
  }
}

module attributes {stable_mosaic.version = 11 : i64} {
  func.func @kernel(%arg0: i32, %arg1: i32, %arg2: memref<32x128xbf16, #tpu.memory_space<vmem>>, %arg3: memref<128x128xbf16, #tpu.memory_space<vmem>>, %arg4: memref<32x128xbf16, #tpu.memory_space<vmem>>, %arg5: memref<1x128xf32, #tpu.memory_space<vmem>>, %arg6: memref<32x1xf32, #tpu.memory_space<vmem>>, %arg7: memref<32x128xbf16, #tpu.memory_space<vmem>>, %arg8: memref<32x128xf32, #tpu.memory_space<vmem>>) attributes {dimension_semantics = [#tpu.dimension_semantics<parallel>, #tpu.dimension_semantics<arbitrary>], iteration_bounds = array<i64: 1, 1>, scalar_prefetch = 0 : i64, scratch_operands = 1 : i64, tpu.core_type = #tpu.core_type<tc>, window_params = [{transform_indices = @transform_0, window_bounds = array<i64: 32, 128>}, {transform_indices = @transform_1, window_bounds = array<i64: 128, 128>}, {transform_indices = @transform_2, window_bounds = array<i64: 32, 128>}, {transform_indices = @transform_3, window_bounds = array<i64: 1, 128>}, {pipeline_mode = #tpu.pipeline_mode<synchronous>, transform_indices = @transform_4, window_bounds = array<i64: 32, 1>}, {transform_indices = @transform_5, window_bounds = array<i64: 32, 128>}]} {
    %c0_i32 = arith.constant 0 : i32
    %0 = arith.cmpi eq, %arg1, %c0_i32 : i32
    %1 = arith.extui %0 : i1 to i32
    %c0_i32_0 = arith.constant 0 : i32
    %2 = arith.cmpi ne, %1, %c0_i32_0 : i32
    scf.if %2 {
      %cst_10 = arith.constant 0.000000e+00 : f32
      %12 = vector.broadcast %cst_10 : f32 to vector<32x128xf32>
      %c0_11 = arith.constant 0 : index
      %c0_12 = arith.constant 0 : index
      %13 = vector.load %arg8[%c0_11, %c0_12] : memref<32x128xf32, #tpu.memory_space<vmem>>, vector<32x128xf32>
      tpu.vector_store %arg8[%c0_11, %c0_12], %12 {strides = array<i32>} : memref<32x128xf32, #tpu.memory_space<vmem>>, vector<32x128xf32>,
    } else {
    }
    %c0 = arith.constant 0 : index
    %c0_1 = arith.constant 0 : index
    %3 = vector.load %arg8[%c0, %c0_1] : memref<32x128xf32, #tpu.memory_space<vmem>>, vector<32x128xf32>
    %c0_2 = arith.constant 0 : index
    %c0_3 = arith.constant 0 : index
    %4 = vector.load %arg2[%c0_2, %c0_3] : memref<32x128xbf16, #tpu.memory_space<vmem>>, vector<32x128xbf16>
    %c0_4 = arith.constant 0 : index
    %c0_5 = arith.constant 0 : index
    %5 = vector.load %arg3[%c0_4, %c0_5] : memref<128x128xbf16, #tpu.memory_space<vmem>>, vector<128x128xbf16>
    %cst = arith.constant dense<0.000000e+00> : vector<32x128xf32>
    %6 = tpu.matmul %4, %5, %cst {dimension_numbers = #tpu.dot_dimension_numbers<[1], [0], [0], [1], [0, 0, 1, 1], [], []>} : vector<32x128xbf16>, vector<128x128xbf16>, vector<32x128xf32> -> vector<32x128xf32>
    %7 = arith.addf %3, %6 : vector<32x128xf32>
    %c0_6 = arith.constant 0 : index
    %c0_7 = arith.constant 0 : index
    %8 = vector.load %arg8[%c0_6, %c0_7] : memref<32x128xf32, #tpu.memory_space<vmem>>, vector<32x128xf32>
    tpu.vector_store %arg8[%c0_6, %c0_7], %7 {strides = array<i32>} : memref<32x128xf32, #tpu.memory_space<vmem>>, vector<32x128xf32>,
    %c0_i32_8 = arith.constant 0 : i32
    %9 = arith.cmpi eq, %arg1, %c0_i32_8 : i32
    %10 = arith.extui %9 : i1 to i32
    %c0_i32_9 = arith.constant 0 : i32
    %11 = arith.cmpi ne, %10, %c0_i32_9 : i32
    scf.if %11 {
      %c0_10 = arith.constant 0 : index
      %c0_11 = arith.constant 0 : index
      %12 = vector.load %arg5[%c0_10, %c0_11] : memref<1x128xf32, #tpu.memory_space<vmem>>, vector<1x128xf32>
      %c0_12 = arith.constant 0 : index
      %c0_13 = arith.constant 0 : index
      %13 = vector.load %arg8[%c0_12, %c0_13] : memref<32x128xf32, #tpu.memory_space<vmem>>, vector<32x128xf32>
      %c0_14 = arith.constant 0 : index
      %c0_15 = arith.constant 0 : index
      %14 = vector.load %arg4[%c0_14, %c0_15] : memref<32x128xbf16, #tpu.memory_space<vmem>>, vector<32x128xbf16>
      %15 = arith.extf %14 : vector<32x128xbf16> to vector<32x128xf32>
      %cst_16 = arith.constant 1.000000e+00 : f32
      %16 = vector.broadcast %cst_16 : f32 to vector<1x128xf32>
      %17 = arith.subf %16, %12 : vector<1x128xf32>
      %18 = vector.broadcast %17 : vector<1x128xf32> to vector<32x128xf32>
      %19 = arith.mulf %13, %18 : vector<32x128xf32>
      %20 = vector.broadcast %12 : vector<1x128xf32> to vector<32x128xf32>
      %21 = arith.mulf %15, %20 : vector<32x128xf32>
      %22 = arith.addf %19, %21 : vector<32x128xf32>
      %c0_17 = arith.constant 0 : index
      %c0_18 = arith.constant 0 : index
      %23 = vector.load %arg6[%c0_17, %c0_18] : memref<32x1xf32, #tpu.memory_space<vmem>>, vector<32x1xf32>
      %24 = vector.broadcast %23 : vector<32x1xf32> to vector<32x128xf32>
      %25 = arith.addf %22, %24 : vector<32x128xf32>
      %cst_19 = arith.constant 0.000000e+00 : f32
      %26 = vector.broadcast %cst_19 : f32 to vector<32x128xf32>
      %27 = arith.maximumf %25, %26 : vector<32x128xf32>
      %28 = arith.truncf %27 : vector<32x128xf32> to vector<32x128xbf16>
      %c0_20 = arith.constant 0 : index
      %c0_21 = arith.constant 0 : index
      %29 = vector.load %arg7[%c0_20, %c0_21] : memref<32x128xbf16, #tpu.memory_space<vmem>>, vector<32x128xbf16>
      tpu.vector_store %arg7[%c0_20, %c0_21], %28 {strides = array<i32>} : memref<32x128xbf16, #tpu.memory_space<vmem>>, vector<32x128xbf16>,
    } else {
    }
    return
  }
  func.func @transform_0(%arg0: i32, %arg1: i32) -> (i32, i32) {
    %c0_i32 = arith.constant 0 : i32
    %c0_i32_0 = arith.constant 0 : i32
    return %c0_i32, %arg1 : i32, i32
  }
  func.func @transform_1(%arg0: i32, %arg1: i32) -> (i32, i32) {
    %c0_i32 = arith.constant 0 : i32
    return %arg1, %arg0 : i32, i32
  }
  func.func @transform_2(%arg0: i32, %arg1: i32) -> (i32, i32) {
    %c0_i32 = arith.constant 0 : i32
    %c0_i32_0 = arith.constant 0 : i32
    return %c0_i32, %arg0 : i32, i32
  }
  func.func @transform_3(%arg0: i32, %arg1: i32) -> (i32, i32) {
    %c0_i32 = arith.constant 0 : i32
    %c0_i32_0 = arith.constant 0 : i32
    return %c0_i32, %arg0 : i32, i32
  }
  func.func @transform_4(%arg0: i32, %arg1: i32) -> (i32, i32) {
    %c0_i32 = arith.constant 0 : i32
    %c0_i32_0 = arith.constant 0 : i32
    %c0_i32_1 = arith.constant 0 : i32
    return %c0_i32, %c0_i32_0 : i32, i32
  }
  func.func @transform_5(%arg0: i32, %arg1: i32) -> (i32, i32) {
    %c0_i32 = arith.constant 0 : i32
    %c0_i32_0 = arith.constant 0 : i32
    return %c0_i32, %arg0 : i32, i32
  }
}

module attributes {stable_mosaic.version = 11 : i64} {
  func.func @linear_kernel(%arg0: i32, %arg1: memref<32x128xbf16, #tpu.memory_space<vmem>>, %arg2: memref<32x32xbf16, #tpu.memory_space<vmem>>, %arg3: memref<32x1xf32, #tpu.memory_space<vmem>>, %arg4: memref<32x128xbf16, #tpu.memory_space<vmem>>) attributes {dimension_semantics = [#tpu.dimension_semantics<parallel>], iteration_bounds = array<i64: 1>, scalar_prefetch = 0 : i64, scratch_operands = 0 : i64, tpu.core_type = #tpu.core_type<tc>, window_params = [{transform_indices = @transform_0, window_bounds = array<i64: 32, 128>}, {pipeline_mode = #tpu.pipeline_mode<synchronous>, transform_indices = @transform_1, window_bounds = array<i64: 32, 32>}, {pipeline_mode = #tpu.pipeline_mode<synchronous>, transform_indices = @transform_2, window_bounds = array<i64: 32, 1>}, {transform_indices = @transform_3, window_bounds = array<i64: 32, 128>}]} {
    %c0 = arith.constant 0 : index
    %c0_0 = arith.constant 0 : index
    %0 = vector.load %arg2[%c0, %c0_0] : memref<32x32xbf16, #tpu.memory_space<vmem>>, vector<32x32xbf16>
    %c0_1 = arith.constant 0 : index
    %c0_2 = arith.constant 0 : index
    %1 = vector.load %arg1[%c0_1, %c0_2] : memref<32x128xbf16, #tpu.memory_space<vmem>>, vector<32x128xbf16>
    %cst = arith.constant dense<0.000000e+00> : vector<32x128xf32>
    %2 = tpu.matmul %0, %1, %cst {dimension_numbers = #tpu.dot_dimension_numbers<[1], [0], [0], [1], [0, 0, 1, 1], [], []>} : vector<32x32xbf16>, vector<32x128xbf16>, vector<32x128xf32> -> vector<32x128xf32>
    %c0_3 = arith.constant 0 : index
    %c0_4 = arith.constant 0 : index
    %3 = vector.load %arg3[%c0_3, %c0_4] : memref<32x1xf32, #tpu.memory_space<vmem>>, vector<32x1xf32>
    %4 = vector.broadcast %3 : vector<32x1xf32> to vector<32x128xf32>
    %5 = arith.addf %2, %4 : vector<32x128xf32>
    %6 = arith.truncf %5 : vector<32x128xf32> to vector<32x128xbf16>
    %c0_5 = arith.constant 0 : index
    %c0_6 = arith.constant 0 : index
    %7 = vector.load %arg4[%c0_5, %c0_6] : memref<32x128xbf16, #tpu.memory_space<vmem>>, vector<32x128xbf16>
    tpu.vector_store %arg4[%c0_5, %c0_6], %6 {strides = array<i32>} : memref<32x128xbf16, #tpu.memory_space<vmem>>, vector<32x128xbf16>,
    return
  }
  func.func @transform_0(%arg0: i32) -> (i32, i32) {
    %c0_i32 = arith.constant 0 : i32
    %c0_i32_0 = arith.constant 0 : i32
    return %c0_i32, %arg0 : i32, i32
  }
  func.func @transform_1(%arg0: i32) -> (i32, i32) {
    %c0_i32 = arith.constant 0 : i32
    %c0_i32_0 = arith.constant 0 : i32
    %c0_i32_1 = arith.constant 0 : i32
    return %c0_i32, %c0_i32_0 : i32, i32
  }
  func.func @transform_2(%arg0: i32) -> (i32, i32) {
    %c0_i32 = arith.constant 0 : i32
    %c0_i32_0 = arith.constant 0 : i32
    %c0_i32_1 = arith.constant 0 : i32
    return %c0_i32, %c0_i32_0 : i32, i32
  }
  func.func @transform_3(%arg0: i32) -> (i32, i32) {
    %c0_i32 = arith.constant 0 : i32
    %c0_i32_0 = arith.constant 0 : i32
    return %c0_i32, %arg0 : i32, i32
  }
}

module attributes {stable_mosaic.version = 11 : i64} {
  func.func @kernel(%arg0: i32, %arg1: i32, %arg2: memref<32x128xbf16, #tpu.memory_space<vmem>>, %arg3: memref<128x128xbf16, #tpu.memory_space<vmem>>, %arg4: memref<32x128xbf16, #tpu.memory_space<vmem>>, %arg5: memref<1x128xf32, #tpu.memory_space<vmem>>, %arg6: memref<32x1xf32, #tpu.memory_space<vmem>>, %arg7: memref<32x128xf32, #tpu.memory_space<vmem>>, %arg8: memref<32x128xf32, #tpu.memory_space<vmem>>) attributes {dimension_semantics = [#tpu.dimension_semantics<parallel>, #tpu.dimension_semantics<arbitrary>], iteration_bounds = array<i64: 1, 1>, scalar_prefetch = 0 : i64, scratch_operands = 1 : i64, tpu.core_type = #tpu.core_type<tc>, window_params = [{transform_indices = @transform_0, window_bounds = array<i64: 32, 128>}, {transform_indices = @transform_1, window_bounds = array<i64: 128, 128>}, {transform_indices = @transform_2, window_bounds = array<i64: 32, 128>}, {transform_indices = @transform_3, window_bounds = array<i64: 1, 128>}, {pipeline_mode = #tpu.pipeline_mode<synchronous>, transform_indices = @transform_4, window_bounds = array<i64: 32, 1>}, {transform_indices = @transform_5, window_bounds = array<i64: 32, 128>}]} {
    %c0_i32 = arith.constant 0 : i32
    %0 = arith.cmpi eq, %arg1, %c0_i32 : i32
    %1 = arith.extui %0 : i1 to i32
    %c0_i32_0 = arith.constant 0 : i32
    %2 = arith.cmpi ne, %1, %c0_i32_0 : i32
    scf.if %2 {
      %cst_10 = arith.constant 0.000000e+00 : f32
      %12 = vector.broadcast %cst_10 : f32 to vector<32x128xf32>
      %c0_11 = arith.constant 0 : index
      %c0_12 = arith.constant 0 : index
      %13 = vector.load %arg8[%c0_11, %c0_12] : memref<32x128xf32, #tpu.memory_space<vmem>>, vector<32x128xf32>
      tpu.vector_store %arg8[%c0_11, %c0_12], %12 {strides = array<i32>} : memref<32x128xf32, #tpu.memory_space<vmem>>, vector<32x128xf32>,
    } else {
    }
    %c0 = arith.constant 0 : index
    %c0_1 = arith.constant 0 : index
    %3 = vector.load %arg8[%c0, %c0_1] : memref<32x128xf32, #tpu.memory_space<vmem>>, vector<32x128xf32>
    %c0_2 = arith.constant 0 : index
    %c0_3 = arith.constant 0 : index
    %4 = vector.load %arg2[%c0_2, %c0_3] : memref<32x128xbf16, #tpu.memory_space<vmem>>, vector<32x128xbf16>
    %c0_4 = arith.constant 0 : index
    %c0_5 = arith.constant 0 : index
    %5 = vector.load %arg3[%c0_4, %c0_5] : memref<128x128xbf16, #tpu.memory_space<vmem>>, vector<128x128xbf16>
    %cst = arith.constant dense<0.000000e+00> : vector<32x128xf32>
    %6 = tpu.matmul %4, %5, %cst {dimension_numbers = #tpu.dot_dimension_numbers<[1], [0], [0], [1], [0, 0, 1, 1], [], []>} : vector<32x128xbf16>, vector<128x128xbf16>, vector<32x128xf32> -> vector<32x128xf32>
    %7 = arith.addf %3, %6 : vector<32x128xf32>
    %c0_6 = arith.constant 0 : index
    %c0_7 = arith.constant 0 : index
    %8 = vector.load %arg8[%c0_6, %c0_7] : memref<32x128xf32, #tpu.memory_space<vmem>>, vector<32x128xf32>
    tpu.vector_store %arg8[%c0_6, %c0_7], %7 {strides = array<i32>} : memref<32x128xf32, #tpu.memory_space<vmem>>, vector<32x128xf32>,
    %c0_i32_8 = arith.constant 0 : i32
    %9 = arith.cmpi eq, %arg1, %c0_i32_8 : i32
    %10 = arith.extui %9 : i1 to i32
    %c0_i32_9 = arith.constant 0 : i32
    %11 = arith.cmpi ne, %10, %c0_i32_9 : i32
    scf.if %11 {
      %c0_10 = arith.constant 0 : index
      %c0_11 = arith.constant 0 : index
      %12 = vector.load %arg5[%c0_10, %c0_11] : memref<1x128xf32, #tpu.memory_space<vmem>>, vector<1x128xf32>
      %c0_12 = arith.constant 0 : index
      %c0_13 = arith.constant 0 : index
      %13 = vector.load %arg8[%c0_12, %c0_13] : memref<32x128xf32, #tpu.memory_space<vmem>>, vector<32x128xf32>
      %c0_14 = arith.constant 0 : index
      %c0_15 = arith.constant 0 : index
      %14 = vector.load %arg4[%c0_14, %c0_15] : memref<32x128xbf16, #tpu.memory_space<vmem>>, vector<32x128xbf16>
      %15 = arith.extf %14 : vector<32x128xbf16> to vector<32x128xf32>
      %cst_16 = arith.constant 1.000000e+00 : f32
      %16 = vector.broadcast %cst_16 : f32 to vector<1x128xf32>
      %17 = arith.subf %16, %12 : vector<1x128xf32>
      %18 = vector.broadcast %17 : vector<1x128xf32> to vector<32x128xf32>
      %19 = arith.mulf %13, %18 : vector<32x128xf32>
      %20 = vector.broadcast %12 : vector<1x128xf32> to vector<32x128xf32>
      %21 = arith.mulf %15, %20 : vector<32x128xf32>
      %22 = arith.addf %19, %21 : vector<32x128xf32>
      %c0_17 = arith.constant 0 : index
      %c0_18 = arith.constant 0 : index
      %23 = vector.load %arg6[%c0_17, %c0_18] : memref<32x1xf32, #tpu.memory_space<vmem>>, vector<32x1xf32>
      %24 = vector.broadcast %23 : vector<32x1xf32> to vector<32x128xf32>
      %25 = arith.addf %22, %24 : vector<32x128xf32>
      %c0_19 = arith.constant 0 : index
      %c0_20 = arith.constant 0 : index
      %26 = vector.load %arg7[%c0_19, %c0_20] : memref<32x128xf32, #tpu.memory_space<vmem>>, vector<32x128xf32>
      tpu.vector_store %arg7[%c0_19, %c0_20], %25 {strides = array<i32>} : memref<32x128xf32, #tpu.memory_space<vmem>>, vector<32x128xf32>,
    } else {
    }
    return
  }
  func.func @transform_0(%arg0: i32, %arg1: i32) -> (i32, i32) {
    %c0_i32 = arith.constant 0 : i32
    %c0_i32_0 = arith.constant 0 : i32
    return %c0_i32, %arg1 : i32, i32
  }
  func.func @transform_1(%arg0: i32, %arg1: i32) -> (i32, i32) {
    %c0_i32 = arith.constant 0 : i32
    return %arg1, %arg0 : i32, i32
  }
  func.func @transform_2(%arg0: i32, %arg1: i32) -> (i32, i32) {
    %c0_i32 = arith.constant 0 : i32
    %c0_i32_0 = arith.constant 0 : i32
    return %c0_i32, %arg0 : i32, i32
  }
  func.func @transform_3(%arg0: i32, %arg1: i32) -> (i32, i32) {
    %c0_i32 = arith.constant 0 : i32
    %c0_i32_0 = arith.constant 0 : i32
    return %c0_i32, %arg0 : i32, i32
  }
  func.func @transform_4(%arg0: i32, %arg1: i32) -> (i32, i32) {
    %c0_i32 = arith.constant 0 : i32
    %c0_i32_0 = arith.constant 0 : i32
    %c0_i32_1 = arith.constant 0 : i32
    return %c0_i32, %c0_i32_0 : i32, i32
  }
  func.func @transform_5(%arg0: i32, %arg1: i32) -> (i32, i32) {
    %c0_i32 = arith.constant 0 : i32
    %c0_i32_0 = arith.constant 0 : i32
    return %c0_i32, %arg0 : i32, i32
  }
}

</mosaic_0001>

<bundles_post_ra>
// kernel: mul.1
= control target key start
LH: loop header
LB: loop body
LE: loop exit
PB: predicated region body
PF: predicated region fallthrough
CT: control target
= control target key end

     0   :  { %s34_s0 = inlined_call_operand.vmem [shape: f32[48], index: 0, kind: input, shape index: {}]   ;;  %s35_s1 = inlined_call_operand.vmem [shape: f32[48], index: 1, kind: input, shape index: {}]   ;;  %s36_s2 = inlined_call_operand.vmem [shape: f32[48], index: 2, kind: output, shape index: {}]  }
   0x1   :  { %v3_v0 = vld [vmem:[%s34_s0] sm:$0x1] }
   0x2   :  { %v4_v1 = vld [vmem:[%s35_s1] sm:$0x1] }
   0x3   :  { %v7_v2 = vmul.f32 %v4_v1, %v3_v0 }
   0x5   :  { %9 = vst [vmem:[%s36_s2] sm:$0x1] %v7_v2 }

// kernel: fpgcn_forward.6
= control target key start
LH: loop header
LB: loop body
LE: loop exit
PB: predicated region body
PF: predicated region fallthrough
CT: control target
= control target key end

     0   :  { %vm61_vm0 = vcmask 1043456   ;;  %vm54_vm1 = vcmask 64512   ;;  %v176_v1 = vmov 0   ;;  %s226_s0 = inlined_call_operand.vmem [shape: bf16[8,128], index: 0, kind: input, shape index: {}]   ;;  %s227_s1 = inlined_call_operand.vmem [shape: bf16[32,8], index: 1, kind: input, shape index: {}]   ;;  %s228_s2 = inlined_call_operand.vmem [shape: f32[32,1], index: 2, kind: input, shape index: {}]   ;;  %s229_s3 = inlined_call_operand.vmem [shape: bf16[32,128], index: 3, kind: output, shape index: {}]  }
   0x1   :  { %v19_v0 = vld [vmem:[%s226_s0] sm:$0xf]  ;;  %173 = vset.pattern.permute.xlu1 %v176_v1  ;;  %172 = vset.pattern.permute.xlu0 %v176_v1  ;;  %v175_v4 = vld [vmem:[%s227_s1 + $0x8] sm:$0xff]   ;;  %v22_v5 = vld [vmem:[%s228_s2 + $0x10] sm:$0xff] }
   0x2   :  { %170 = vmatprep.subr.msk.bf16.mxu0 %vm61_vm0, %v19_v0  ;;  %v63_v2 = vsel %vm61_vm0, %v19_v0, 0  ;;  %v174_v3 = vld [vmem:[%s227_s1] sm:$0xff]   ;;  %36 = vperm.xlu1 %173, %v22_v5   ;;  %v23_v7 = vld [vmem:[%s228_s2 + $0x18] sm:$0xff]  ;;  %v21_v8 = vld [vmem:[%s228_s2 + $0x8] sm:$0xff] }
   0x3   :  { %165 = vmatpush3.bf16.msra.mxu0 %v63_v2  ;;  %v20_v6 = vld [vmem:[%s228_s2] sm:$0xff]  ;;  %166 = vmatprep.mubr.msk.bf16.mxu0 %vm54_vm1, %v174_v3 }
   0x4   :  { %26 = vperm.xlu0 %172, %v20_v6  }
   0x6   :  { %167 = vmatmul.mubr.msk.bf16.vlgmr.msra.gmra.mrb[0].mxu0 %vm54_vm1, %v175_v4  ;;  %41 = vperm.xlu1 %173, %v23_v7  }
   0x8   :  { %31 = vperm.xlu0 %172, %v21_v8  }
  0x81   :  { %v37_v9 = vpop.permute.xlu1 %36 }
  0x83   :  { %v27_v10 = vpop.permute.xlu0 %26 }
  0x85   :  { %v42_v13 = vpop.permute.xlu1 %41 }
  0x87   :  { %v32_v15 = vpop.permute.xlu0 %31 }
  0xd9   :  { %v168_v11 = vpop.f32.mrb[0].mxu0 }
  0xda   :  { %v99_v12 = vpop.f32.mrb[1].mxu0  ;;  %v108_v16 = vadd.f32 %v168_v11, %v37_v9 }
  0xdb   :  { %v169_v14 = vpop.f32.mrb[2].mxu0  ;;  %v100_v19 = vadd.f32 %v99_v12, %v27_v10 }
  0xdc   :  { %v111_v17 = vadd.f32 %v169_v14, %v42_v13  ;;  %v102_v18 = vpop.f32.mrb[3].mxu0 }
  0xdd   :  { %v103_v20 = vadd.f32 %v102_v18, %v32_v15 }
  0xde   :  { %v158_v21 = vpack.c.bf16 %v111_v17, %v108_v16 }
  0xdf   :  { %v153_v22 = vpack.c.bf16 %v103_v20, %v100_v19 }
  0xe0   :  { %160 = vst [vmem:[%s229_s3 + $0x8] sm:$0xff] %v158_v21  }
  0xe1   :  { %154 = vst [vmem:[%s229_s3] sm:$0xff] %v153_v22  }

// kernel: fpgcn_forward.7
= control target key start
LH: loop header
LB: loop body
LE: loop exit
PB: predicated region body
PF: predicated region fallthrough
CT: control target
= control target key end

     0   :  { %v187_v10 = vlaneseq  ;;  %s388_s1 = inlined_call_operand.vmem [shape: bf16[128,128], index: 1, kind: input, shape index: {}]   ;;  %s389_s4 = inlined_call_operand.vmem [shape: f32[32,1], index: 4, kind: input, shape index: {}]   ;;  %s390_s0 = inlined_call_operand.vmem [shape: bf16[32,128], index: 0, kind: input, shape index: {}, may-alias: {0,2}]   ;;  %s391_s3 = inlined_call_operand.vmem [shape: f32[1,128], index: 3, kind: input, shape index: {}]   ;;  %s392_s2 = inlined_call_operand.vmem [shape: bf16[32,128], index: 2, kind: input, shape index: {}, may-alias: {0,2}]   ;;  %s393_s5 = inlined_call_operand.vmem [shape: bf16[32,128], index: 5, kind: output, shape index: {}]  }
   0x1   :  { %v303_v0 = vld [vmem:[%s388_s1] sm:$0xff]   ;;  %v304_v1 = vld [vmem:[%s388_s1 + $0x8] sm:$0xff]   ;;  %v305_v2 = vld [vmem:[%s388_s1 + $0x10] sm:$0xff]  }
   0x2   :  { %283 = vmatprep.subr.bf16.mxu0 %v303_v0  ;;  %v306_v3 = vld [vmem:[%s388_s1 + $0x18] sm:$0xff]   ;;  %v311_v4 = vld [vmem:[%s390_s0] sm:$0xff]   ;;  %v308_v6 = vld [vmem:[%s388_s1 + $0x28] sm:$0xff]   ;;  %v188_v11 = vshrl.u32 %v187_v10, 7 }
   0x3   :  { %284 = vmatpush3.bf16.msra.mxu0 %v303_v0  ;;  %299 = vmatprep.mubr.bf16.mxu0 %v311_v4  ;;  %v307_v5 = vld [vmem:[%s388_s1 + $0x20] sm:$0xff]   ;;  %v309_v7 = vld [vmem:[%s388_s1 + $0x30] sm:$0xff]   ;;  %v310_v8 = vld [vmem:[%s388_s1 + $0x38] sm:$0xff]  }
   0x4   :  { %285 = vmatprep.subr.bf16.mxu0 %v304_v1  ;;  %v312_v9 = vld [vmem:[%s390_s0 + $0x8] sm:$0xff]   ;;  %v173_v12 = vld [vmem:[%s391_s3] sm:$0x1]  ;;  %v189_v13 = vsub.s32 0, %v188_v11 }
   0x5   :  { %v196_v14 = vsub.f32 1.0, %v173_v12  ;;  %v271_v15 = vld [vmem:[%s392_s2 + $0x8] sm:$0xff]   ;;  %v254_v16 = vld [vmem:[%s392_s2] sm:$0xff]  }
   0x6   :  { %v259_v17 = vunpack.c.l.bf16 %v271_v15  ;;  %v190_v18 = vrot.slane %v173_v12, %v189_v13  ;;  %v260_v20 = vunpack.c.h.bf16 %v271_v15  ;;  %v255_v21 = vunpack.c.l.bf16 %v254_v16 }
   0x7   :  { %286 = vmatpush3.bf16.msra.mxu0 %v304_v1  ;;  %v201_v19 = vrot.slane %v196_v14, %v189_v13  ;;  %v256_v22 = vunpack.c.h.bf16 %v254_v16 }
   0x8   :  { %287 = vmatprep.subr.bf16.mxu0 %v305_v2 }
   0x9   :  { %v205_v25 = vmul.f32 %v259_v17, %v201_v19  ;;  %v206_v27 = vmul.f32 %v260_v20, %v201_v19  ;;  %v203_v29 = vmul.f32 %v255_v21, %v201_v19  ;;  %v204_v31 = vmul.f32 %v256_v22, %v201_v19 }
   0xb   :  { %288 = vmatpush3.bf16.msra.mxu0 %v305_v2 }
   0xc   :  { %289 = vmatprep.subr.bf16.mxu0 %v306_v3 }
   0xf   :  { %290 = vmatpush3.bf16.msra.mxu0 %v306_v3 }
  0x10   :  { %291 = vmatprep.subr.bf16.mxu0 %v307_v5 }
  0x13   :  { %292 = vmatpush3.bf16.msra.mxu0 %v307_v5 }
  0x14   :  { %293 = vmatprep.subr.bf16.mxu0 %v308_v6 }
  0x17   :  { %294 = vmatpush3.bf16.msra.mxu0 %v308_v6 }
  0x18   :  { %295 = vmatprep.subr.bf16.mxu0 %v309_v7 }
  0x1b   :  { %296 = vmatpush3.bf16.msra.mxu0 %v309_v7 }
  0x1c   :  { %297 = vmatprep.subr.bf16.mxu0 %v310_v8 }
  0x1f   :  { %298 = vmatpush3.bf16.msra.mxu0 %v310_v8 }
  0x22   :  { %300 = vmatmul.mubr.bf16.vlgmr.msra.gmra.mrb[0].mxu0 %v312_v9 }
  0xf5   :  { %v301_v23 = vpop.f32.mrb[0].mxu0 }
  0xf6   :  { %v194_v24 = vmul.f32 %v301_v23, %v190_v18  ;;  %v147_v26 = vpop.f32.mrb[1].mxu0 }
  0xf7   :  { %v192_v28 = vmul.f32 %v190_v18, %v147_v26  ;;  %v302_v30 = vpop.f32.mrb[2].mxu0 }
  0xf8   :  { %v195_v32 = vmul.f32 %v302_v30, %v190_v18  ;;  %v150_v33 = vpop.f32.mrb[3].mxu0  ;;  %v209_v35 = vadd.f32 %v205_v25, %v194_v24 }
  0xf9   :  { %v193_v34 = vmul.f32 %v190_v18, %v150_v33  ;;  %v207_v37 = vadd.f32 %v203_v29, %v192_v28 }
  0xfa   :  { %v210_v36 = vadd.f32 %v206_v27, %v195_v32 }
  0xfb   :  { %v208_v38 = vadd.f32 %v204_v31, %v193_v34 }
  0xfc   :  { %v269_v39 = vpack.c.bf16 %v210_v36, %v209_v35 }
  0xfd   :  { %v264_v40 = vpack.c.bf16 %v208_v38, %v207_v37 }
  0xfe   :  { %272 = vst [vmem:[%s393_s5 + $0x8] sm:$0xff] %v269_v39  }
  0xff   :  { %265 = vst [vmem:[%s393_s5] sm:$0xff] %v264_v40  }

// kernel: fpgcn_forward.8
= control target key start
LH: loop header
LB: loop body
LE: loop exit
PB: predicated region body
PF: predicated region fallthrough
CT: control target
= control target key end

     0   :  { %v348_v1 = vmov 0   ;;  %v188_v15 = vlaneseq  ;;  %s436_s1 = inlined_call_operand.vmem [shape: bf16[128,128], index: 1, kind: input, shape index: {}]   ;;  %s437_s0 = inlined_call_operand.vmem [shape: bf16[32,128], index: 0, kind: input, shape index: {}]   ;;  %s438_s4 = inlined_call_operand.vmem [shape: f32[32,1], index: 4, kind: input, shape index: {}]   ;;  %s439_s3 = inlined_call_operand.vmem [shape: f32[1,128], index: 3, kind: input, shape index: {}]   ;;  %s440_s2 = inlined_call_operand.vmem [shape: bf16[32,128], index: 2, kind: input, shape index: {}]   ;;  %s441_s5 = inlined_call_operand.vmem [shape: bf16[32,128], index: 5, kind: output, shape index: {}]  }
   0x1   :  { %v338_v0 = vld [vmem:[%s436_s1] sm:$0xff]   ;;  %337 = vset.pattern.permute.xlu1 %v348_v1  ;;  %336 = vset.pattern.permute.xlu0 %v348_v1  ;;  %v339_v2 = vld [vmem:[%s436_s1 + $0x8] sm:$0xff]   ;;  %v340_v3 = vld [vmem:[%s436_s1 + $0x10] sm:$0xff]  }
   0x2   :  { %315 = vmatprep.subr.bf16.mxu0 %v338_v0  ;;  %v341_v4 = vld [vmem:[%s436_s1 + $0x18] sm:$0xff]   ;;  %v346_v5 = vld [vmem:[%s437_s0] sm:$0xff]   ;;  %v213_v6 = vld [vmem:[%s438_s4 + $0x10] sm:$0xff]  ;;  %v189_v16 = vshrl.u32 %v188_v15, 7 }
   0x3   :  { %316 = vmatpush3.bf16.msra.mxu0 %v338_v0  ;;  %331 = vmatprep.mubr.bf16.mxu0 %v346_v5  ;;  %v211_v7 = vld [vmem:[%s438_s4] sm:$0xff]  ;;  %v214_v9 = vld [vmem:[%s438_s4 + $0x18] sm:$0xff]  ;;  %v212_v10 = vld [vmem:[%s438_s4 + $0x8] sm:$0xff] }
   0x4   :  { %317 = vmatprep.subr.bf16.mxu0 %v339_v2  ;;  %227 = vperm.xlu1 %337, %v213_v6   ;;  %v342_v8 = vld [vmem:[%s436_s1 + $0x20] sm:$0xff]   ;;  %v343_v11 = vld [vmem:[%s436_s1 + $0x28] sm:$0xff]   ;;  %v344_v12 = vld [vmem:[%s436_s1 + $0x30] sm:$0xff]   ;;  %v190_v18 = vsub.s32 0, %v189_v16 }
   0x5   :  { %217 = vperm.xlu0 %336, %v211_v7   ;;  %v345_v13 = vld [vmem:[%s436_s1 + $0x38] sm:$0xff]   ;;  %v347_v14 = vld [vmem:[%s437_s0 + $0x8] sm:$0xff]   ;;  %v173_v17 = vld [vmem:[%s439_s3] sm:$0x1] }
   0x6   :  { %v303_v19 = vld [vmem:[%s440_s2 + $0x8] sm:$0xff]   ;;  %v186_v20 = vsub.f32 1.0, %v173_v17  ;;  %v286_v21 = vld [vmem:[%s440_s2] sm:$0xff]   ;;  %v201_v23 = vrot.slane %v173_v17, %v190_v18 }
   0x7   :  { %318 = vmatpush3.bf16.msra.mxu0 %v339_v2  ;;  %v291_v22 = vunpack.c.l.bf16 %v303_v19  ;;  %v287_v24 = vunpack.c.l.bf16 %v286_v21  ;;  %v292_v26 = vunpack.c.h.bf16 %v303_v19  ;;  %v288_v27 = vunpack.c.h.bf16 %v286_v21 }
   0x8   :  { %319 = vmatprep.subr.bf16.mxu0 %v340_v3  ;;  %232 = vperm.xlu1 %337, %v214_v9   ;;  %v191_v25 = vrot.slane %v186_v20, %v190_v18 }
   0x9   :  { %222 = vperm.xlu0 %336, %v212_v10   ;;  %v205_v28 = vmul.f32 %v291_v22, %v201_v23  ;;  %v203_v31 = vmul.f32 %v287_v24, %v201_v23  ;;  %v206_v35 = vmul.f32 %v292_v26, %v201_v23  ;;  %v204_v38 = vmul.f32 %v288_v27, %v201_v23 }
   0xb   :  { %320 = vmatpush3.bf16.msra.mxu0 %v340_v3 }
   0xc   :  { %321 = vmatprep.subr.bf16.mxu0 %v341_v4 }
   0xf   :  { %322 = vmatpush3.bf16.msra.mxu0 %v341_v4 }
  0x10   :  { %323 = vmatprep.subr.bf16.mxu0 %v342_v8 }
  0x13   :  { %324 = vmatpush3.bf16.msra.mxu0 %v342_v8 }
  0x14   :  { %325 = vmatprep.subr.bf16.mxu0 %v343_v11 }
  0x17   :  { %326 = vmatpush3.bf16.msra.mxu0 %v343_v11 }
  0x18   :  { %327 = vmatprep.subr.bf16.mxu0 %v344_v12 }
  0x1b   :  { %328 = vmatpush3.bf16.msra.mxu0 %v344_v12 }
  0x1c   :  { %329 = vmatprep.subr.bf16.mxu0 %v345_v13 }
  0x1f   :  { %330 = vmatpush3.bf16.msra.mxu0 %v345_v13 }
  0x22   :  { %332 = vmatmul.mubr.bf16.vlgmr.msra.gmra.mrb[0].mxu0 %v347_v14 }
  0x83   :  { %v228_v29 = vpop.permute.xlu1 %227 }
  0x84   :  { %v218_v32 = vpop.permute.xlu0 %217 }
  0x87   :  { %v233_v47 = vpop.permute.xlu1 %232 }
  0x88   :  { %v223_v50 = vpop.permute.xlu0 %222 }
  0xf5   :  { %v333_v30 = vpop.f32.mrb[0].mxu0 }
  0xf6   :  { %v195_v33 = vmul.f32 %v333_v30, %v191_v25  ;;  %v147_v34 = vpop.f32.mrb[1].mxu0 }
  0xf7   :  { %v193_v36 = vmul.f32 %v191_v25, %v147_v34  ;;  %v334_v37 = vpop.f32.mrb[2].mxu0 }
  0xf8   :  { %v209_v39 = vadd.f32 %v205_v28, %v195_v33  ;;  %v196_v40 = vmul.f32 %v334_v37, %v191_v25  ;;  %v150_v41 = vpop.f32.mrb[3].mxu0 }
  0xf9   :  { %v207_v42 = vadd.f32 %v203_v31, %v193_v36  ;;  %v194_v43 = vmul.f32 %v191_v25, %v150_v41 }
  0xfa   :  { %v237_v44 = vadd.f32 %v228_v29, %v209_v39  ;;  %v210_v45 = vadd.f32 %v206_v35, %v196_v40 }
  0xfb   :  { %v235_v46 = vadd.f32 %v218_v32, %v207_v42  ;;  %v208_v48 = vadd.f32 %v204_v38, %v194_v43 }
  0xfc   :  { %v238_v49 = vadd.f32 %v233_v47, %v210_v45  ;;  %v241_v52 = vmax.f32 %v237_v44, 0.0 }
  0xfd   :  { %v236_v51 = vadd.f32 %v223_v50, %v208_v48  ;;  %v239_v54 = vmax.f32 %v235_v46, 0.0 }
  0xfe   :  { %v242_v53 = vmax.f32 %v238_v49, 0.0 }
  0xff   :  { %v240_v55 = vmax.f32 %v236_v51, 0.0 }
 0x100   :  { %v301_v56 = vpack.c.bf16 %v242_v53, %v241_v52 }
 0x101   :  { %v296_v57 = vpack.c.bf16 %v240_v55, %v239_v54 }
 0x102   :  { %304 = vst [vmem:[%s441_s5 + $0x8] sm:$0xff] %v301_v56  }
 0x103   :  { %297 = vst [vmem:[%s441_s5] sm:$0xff] %v296_v57  }

// kernel: fpgcn_forward.9
= control target key start
LH: loop header
LB: loop body
LE: loop exit
PB: predicated region body
PF: predicated region fallthrough
CT: control target
= control target key end

     0   :  { %v193_v1 = vmov 0   ;;  %vm69_vm0 = vcmask 261120   ;;  %s246_s0 = inlined_call_operand.vmem [shape: bf16[32,128], index: 0, kind: input, shape index: {}]   ;;  %s247_s1 = inlined_call_operand.vmem [shape: bf16[32,32], index: 1, kind: input, shape index: {}]   ;;  %s248_s2 = inlined_call_operand.vmem [shape: f32[32,1], index: 2, kind: input, shape index: {}]   ;;  %s249_s3 = inlined_call_operand.vmem [shape: bf16[32,128], index: 3, kind: output, shape index: {}]  }
   0x1   :  { %v189_v0 = vld [vmem:[%s246_s0] sm:$0xff]   ;;  %188 = vset.pattern.permute.xlu1 %v193_v1  ;;  %187 = vset.pattern.permute.xlu0 %v193_v1  ;;  %v190_v2 = vld [vmem:[%s246_s0 + $0x8] sm:$0xff]   ;;  %v25_v4 = vld [vmem:[%s248_s2 + $0x10] sm:$0xff] }
   0x2   :  { %178 = vmatprep.subr.bf16.mxu0 %v189_v0  ;;  %v191_v3 = vld [vmem:[%s247_s1] sm:$0xff]   ;;  %39 = vperm.xlu1 %188, %v25_v4   ;;  %v192_v6 = vld [vmem:[%s247_s1 + $0x8] sm:$0xff]   ;;  %v26_v7 = vld [vmem:[%s248_s2 + $0x18] sm:$0xff] }
   0x3   :  { %179 = vmatpush3.bf16.msra.mxu0 %v189_v0  ;;  %182 = vmatprep.mubr.msk.bf16.mxu0 %vm69_vm0, %v191_v3  ;;  %v23_v5 = vld [vmem:[%s248_s2] sm:$0xff]  ;;  %v24_v8 = vld [vmem:[%s248_s2 + $0x8] sm:$0xff] }
   0x4   :  { %180 = vmatprep.subr.bf16.mxu0 %v190_v2  ;;  %29 = vperm.xlu0 %187, %v23_v5  }
   0x6   :  { %44 = vperm.xlu1 %188, %v26_v7  }
   0x7   :  { %181 = vmatpush3.bf16.msra.mxu0 %v190_v2 }
   0x8   :  { %34 = vperm.xlu0 %187, %v24_v8  }
   0xa   :  { %183 = vmatmul.mubr.msk.bf16.vlgmr.msra.gmra.mrb[0].mxu0 %vm69_vm0, %v192_v6 }
  0x81   :  { %v40_v9 = vpop.permute.xlu1 %39 }
  0x83   :  { %v30_v10 = vpop.permute.xlu0 %29 }
  0x85   :  { %v45_v13 = vpop.permute.xlu1 %44 }
  0x87   :  { %v35_v15 = vpop.permute.xlu0 %34 }
  0xdd   :  { %v184_v11 = vpop.f32.mrb[0].mxu0 }
  0xde   :  { %v110_v12 = vpop.f32.mrb[1].mxu0  ;;  %v119_v16 = vadd.f32 %v184_v11, %v40_v9 }
  0xdf   :  { %v185_v14 = vpop.f32.mrb[2].mxu0  ;;  %v111_v19 = vadd.f32 %v110_v12, %v30_v10 }
  0xe0   :  { %v122_v17 = vadd.f32 %v185_v14, %v45_v13  ;;  %v113_v18 = vpop.f32.mrb[3].mxu0 }
  0xe1   :  { %v114_v20 = vadd.f32 %v113_v18, %v35_v15 }
  0xe2   :  { %v171_v21 = vpack.c.bf16 %v122_v17, %v119_v16 }
  0xe3   :  { %v166_v22 = vpack.c.bf16 %v114_v20, %v111_v19 }
  0xe4   :  { %173 = vst [vmem:[%s249_s3 + $0x8] sm:$0xff] %v171_v21  }
  0xe5   :  { %167 = vst [vmem:[%s249_s3] sm:$0xff] %v166_v22  }

// kernel: fpgcn_forward.11
= control target key start
LH: loop header
LB: loop body
LE: loop exit
PB: predicated region body
PF: predicated region fallthrough
CT: control target
= control target key end

     0   :  { %v309_v1 = vmov 0   ;;  %v188_v15 = vlaneseq  ;;  %s403_s1 = inlined_call_operand.vmem [shape: bf16[128,128], index: 1, kind: input, shape index: {}]   ;;  %s404_s0 = inlined_call_operand.vmem [shape: bf16[32,128], index: 0, kind: input, shape index: {}]   ;;  %s405_s4 = inlined_call_operand.vmem [shape: f32[32,1], index: 4, kind: input, shape index: {}]   ;;  %s406_s3 = inlined_call_operand.vmem [shape: f32[1,128], index: 3, kind: input, shape index: {}]   ;;  %s407_s2 = inlined_call_operand.vmem [shape: bf16[32,128], index: 2, kind: input, shape index: {}]   ;;  %s408_s5 = inlined_call_operand.vmem [shape: f32[32,128], index: 5, kind: output, shape index: {}]  }
   0x1   :  { %v299_v0 = vld [vmem:[%s403_s1] sm:$0xff]   ;;  %298 = vset.pattern.permute.xlu1 %v309_v1  ;;  %297 = vset.pattern.permute.xlu0 %v309_v1  ;;  %v300_v2 = vld [vmem:[%s403_s1 + $0x8] sm:$0xff]   ;;  %v301_v3 = vld [vmem:[%s403_s1 + $0x10] sm:$0xff]  }
   0x2   :  { %276 = vmatprep.subr.bf16.mxu0 %v299_v0  ;;  %v302_v4 = vld [vmem:[%s403_s1 + $0x18] sm:$0xff]   ;;  %v307_v5 = vld [vmem:[%s404_s0] sm:$0xff]   ;;  %v213_v6 = vld [vmem:[%s405_s4 + $0x10] sm:$0xff]  ;;  %v189_v16 = vshrl.u32 %v188_v15, 7 }
   0x3   :  { %277 = vmatpush3.bf16.msra.mxu0 %v299_v0  ;;  %292 = vmatprep.mubr.bf16.mxu0 %v307_v5  ;;  %v211_v7 = vld [vmem:[%s405_s4] sm:$0xff]  ;;  %v214_v9 = vld [vmem:[%s405_s4 + $0x18] sm:$0xff]  ;;  %v212_v10 = vld [vmem:[%s405_s4 + $0x8] sm:$0xff] }
   0x4   :  { %278 = vmatprep.subr.bf16.mxu0 %v300_v2  ;;  %227 = vperm.xlu1 %298, %v213_v6   ;;  %v303_v8 = vld [vmem:[%s403_s1 + $0x20] sm:$0xff]   ;;  %v304_v11 = vld [vmem:[%s403_s1 + $0x28] sm:$0xff]   ;;  %v305_v12 = vld [vmem:[%s403_s1 + $0x30] sm:$0xff]   ;;  %v190_v18 = vsub.s32 0, %v189_v16 }
   0x5   :  { %217 = vperm.xlu0 %297, %v211_v7   ;;  %v306_v13 = vld [vmem:[%s403_s1 + $0x38] sm:$0xff]   ;;  %v308_v14 = vld [vmem:[%s404_s0 + $0x8] sm:$0xff]   ;;  %v173_v17 = vld [vmem:[%s406_s3] sm:$0x1] }
   0x6   :  { %v265_v19 = vld [vmem:[%s407_s2 + $0x8] sm:$0xff]   ;;  %v186_v20 = vsub.f32 1.0, %v173_v17  ;;  %v258_v21 = vld [vmem:[%s407_s2] sm:$0xff]   ;;  %v201_v23 = vrot.slane %v173_v17, %v190_v18 }
   0x7   :  { %279 = vmatpush3.bf16.msra.mxu0 %v300_v2  ;;  %v263_v22 = vunpack.c.l.bf16 %v265_v19  ;;  %v259_v24 = vunpack.c.l.bf16 %v258_v21  ;;  %v264_v26 = vunpack.c.h.bf16 %v265_v19  ;;  %v260_v27 = vunpack.c.h.bf16 %v258_v21 }
   0x8   :  { %280 = vmatprep.subr.bf16.mxu0 %v301_v3  ;;  %232 = vperm.xlu1 %298, %v214_v9   ;;  %v191_v25 = vrot.slane %v186_v20, %v190_v18 }
   0x9   :  { %222 = vperm.xlu0 %297, %v212_v10   ;;  %v205_v28 = vmul.f32 %v263_v22, %v201_v23  ;;  %v203_v31 = vmul.f32 %v259_v24, %v201_v23  ;;  %v206_v35 = vmul.f32 %v264_v26, %v201_v23  ;;  %v204_v38 = vmul.f32 %v260_v27, %v201_v23 }
   0xb   :  { %281 = vmatpush3.bf16.msra.mxu0 %v301_v3 }
   0xc   :  { %282 = vmatprep.subr.bf16.mxu0 %v302_v4 }
   0xf   :  { %283 = vmatpush3.bf16.msra.mxu0 %v302_v4 }
  0x10   :  { %284 = vmatprep.subr.bf16.mxu0 %v303_v8 }
  0x13   :  { %285 = vmatpush3.bf16.msra.mxu0 %v303_v8 }
  0x14   :  { %286 = vmatprep.subr.bf16.mxu0 %v304_v11 }
  0x17   :  { %287 = vmatpush3.bf16.msra.mxu0 %v304_v11 }
  0x18   :  { %288 = vmatprep.subr.bf16.mxu0 %v305_v12 }
  0x1b   :  { %289 = vmatpush3.bf16.msra.mxu0 %v305_v12 }
  0x1c   :  { %290 = vmatprep.subr.bf16.mxu0 %v306_v13 }
  0x1f   :  { %291 = vmatpush3.bf16.msra.mxu0 %v306_v13 }
  0x22   :  { %293 = vmatmul.mubr.bf16.vlgmr.msra.gmra.mrb[0].mxu0 %v308_v14 }
  0x83   :  { %v228_v29 = vpop.permute.xlu1 %227 }
  0x84   :  { %v218_v32 = vpop.permute.xlu0 %217 }
  0x87   :  { %v233_v47 = vpop.permute.xlu1 %232 }
  0x88   :  { %v223_v50 = vpop.permute.xlu0 %222 }
  0xf5   :  { %v294_v30 = vpop.f32.mrb[0].mxu0 }
  0xf6   :  { %v195_v33 = vmul.f32 %v294_v30, %v191_v25  ;;  %v147_v34 = vpop.f32.mrb[1].mxu0 }
  0xf7   :  { %v193_v36 = vmul.f32 %v191_v25, %v147_v34  ;;  %v295_v37 = vpop.f32.mrb[2].mxu0 }
  0xf8   :  { %v209_v39 = vadd.f32 %v205_v28, %v195_v33  ;;  %v196_v40 = vmul.f32 %v295_v37, %v191_v25  ;;  %v150_v41 = vpop.f32.mrb[3].mxu0 }
  0xf9   :  { %v207_v42 = vadd.f32 %v203_v31, %v193_v36  ;;  %v194_v43 = vmul.f32 %v191_v25, %v150_v41 }
  0xfa   :  { %v237_v44 = vadd.f32 %v228_v29, %v209_v39  ;;  %v210_v45 = vadd.f32 %v206_v35, %v196_v40 }
  0xfb   :  { %v235_v46 = vadd.f32 %v218_v32, %v207_v42  ;;  %v208_v48 = vadd.f32 %v204_v38, %v194_v43 }
  0xfc   :  { %241 = vst [vmem:[%s408_s5 + $0x10] sm:$0xff] %v237_v44  ;;  %v238_v49 = vadd.f32 %v233_v47, %v210_v45 }
  0xfd   :  { %239 = vst [vmem:[%s408_s5] sm:$0xff] %v235_v46  ;;  %v236_v51 = vadd.f32 %v223_v50, %v208_v48 }
  0xfe   :  { %242 = vst [vmem:[%s408_s5 + $0x18] sm:$0xff] %v238_v49 }
  0xff   :  { %240 = vst [vmem:[%s408_s5 + $0x8] sm:$0xff] %v236_v51 }

</bundles_post_ra>
